<compile_context>
chip_gen: v7x
topology: tpu7x:2x2x1
jax: 0.10.0
libtpu: 0.0.40
codegen_flags: <defaults>
</compile_context>

<pallas_src>
import jax
import jax.numpy as jnp
from jax import lax
from jax.experimental import pallas as pl
from jax.experimental.pallas import tpu as pltpu


def _round_up(n: int, m: int) -> int:
    return ((n + m - 1) // m) * m


# ----------------------------- kernel --------------------------------------
def _make_gru_kernel(hidden: int, t_blk: int):
    D = hidden

    def kernel(g_ref, w_ref, bhn_ref, o_ref, h_scr):
        # Reset the carried hidden state at the first time-block of each batch block.
        @pl.when(pl.program_id(1) == 0)
        def _():
            h_scr[...] = jnp.zeros_like(h_scr)

        w = w_ref[...]          # (2D, 6D) bf16, resident block-diag recurrent weight
        bhn = bhn_ref[...]      # (1, 2D)  f32, [b_hh_n_fwd | b_hh_n_bwd]

        def step(i, h):
            # h: (B_blk, 2D) f32 = [h_fwd | h_bwd]
            # gi: precomputed x-projection, layout [r_f r_b z_f z_b n_f n_b]
            gi = g_ref[i].astype(jnp.float32)                        # (B_blk, 6D)
            hh = jnp.dot(h.astype(jnp.bfloat16), w,
                         preferred_element_type=jnp.float32)         # (B_blk, 6D)
            rz = jax.nn.sigmoid(gi[:, :4 * D] + hh[:, :4 * D])       # one wide sigmoid
            r = rz[:, :2 * D]
            z = rz[:, 2 * D:]
            n = jnp.tanh(gi[:, 4 * D:] + r * (hh[:, 4 * D:] + bhn))
            h_new = (1.0 - z) * n + z * h
            o_ref[i] = h_new.astype(o_ref.dtype)                     # lane-dense (B, 2D)
            return h_new

        h_scr[...] = lax.fori_loop(0, t_blk, step, h_scr[...], unroll=True)

    return kernel


def _vmem_limit_bytes(t_blk, b_blk, D, out_itemsize):
    gate_blk = t_blk * b_blk * 6 * D * 2            # bf16 gates, per buffer
    out_blk = t_blk * b_blk * 2 * D * out_itemsize
    w_bytes = 2 * D * 6 * D * 2                     # bf16 resident weight
    scratch = b_blk * 2 * D * 4
    est = 2 * (gate_blk + out_blk) + w_bytes + scratch + (1 << 16)
    return int(min(max(2 * est, 32 * 1024 * 1024), 64 * 1024 * 1024))


def _gru_recurrence(gates, w_fused, bhn, out_dtype, D, t_blk, b_blk):
    Lp, B, G6 = gates.shape
    nb = B // b_blk
    nt = Lp // t_blk
    out_itemsize = jnp.dtype(out_dtype).itemsize

    return pl.pallas_call(
        _make_gru_kernel(D, t_blk),
        out_shape=jax.ShapeDtypeStruct((Lp, B, 2 * D), out_dtype),
        grid_spec=pltpu.PrefetchScalarGridSpec(
            num_scalar_prefetch=0,
            grid=(nb, nt),
            in_specs=[
                pl.BlockSpec((t_blk, b_blk, G6), lambda b, t: (t, b, 0)),   # gates
                pl.BlockSpec((2 * D, G6), lambda b, t: (0, 0)),             # W (resident)
                pl.BlockSpec((1, 2 * D), lambda b, t: (0, 0)),              # b_hh_n (resident)
            ],
            out_specs=pl.BlockSpec((t_blk, b_blk, 2 * D), lambda b, t: (t, b, 0)),
            scratch_shapes=[pltpu.VMEM((b_blk, 2 * D), jnp.float32)],       # h carry
        ),
        compiler_params=pltpu.CompilerParams(
            # Batch blocks are independent (megacore / v7x dual-TC); the time axis
            # carries the recurrent state and must stay sequential.
            dimension_semantics=("parallel", "arbitrary"),
            vmem_limit_bytes=_vmem_limit_bytes(t_blk, b_blk, D, out_itemsize),
        ),
    )(gates, w_fused, bhn)


# --------------------------- wrapper / prep ---------------------------------
def _prepare_inputs(y, w_ih_f, w_hh_f, b_ih_f, b_hh_f,
                    w_ih_b, w_hh_b, b_ih_b, b_hh_b):
    """Fused input projections, bias folding, fused recurrent weight.

    Returns:
      gates   : (L, B, 6D) bf16, layout [r_f r_b z_f z_b n_f n_b];
                backward-direction columns are already time-reversed.
      w_fused : (2D, 6D)  bf16 block-diagonal recurrent weight.
      bhn     : (1, 2D)   f32 hidden bias for the n gate (fwd | bwd).
    """
    B, L, _ = y.shape
    D = w_hh_f.shape[1]
    G = 3 * D

    # One fused bf16 einsum for both directions, f32 accumulate.
    w_ih_cat = jnp.concatenate([w_ih_f, w_ih_b], axis=0).astype(jnp.bfloat16)
    proj = jnp.einsum('bli,gi->lbg', y.astype(jnp.bfloat16), w_ih_cat,
                      preferred_element_type=jnp.float32)              # (L, B, 6D)

    # Fold b_ih fully and the r/z slices of b_hh into the precomputed gates.
    zero_n = jnp.zeros((D,), jnp.float32)
    bias_f = b_ih_f.astype(jnp.float32) + jnp.concatenate(
        [b_hh_f[:2 * D].astype(jnp.float32), zero_n])
    bias_b = b_ih_b.astype(jnp.float32) + jnp.concatenate(
        [b_hh_b[:2 * D].astype(jnp.float32), zero_n])
    gi_f = proj[..., :G] + bias_f
    gi_b = proj[..., G:] + bias_b
    gi_b = gi_b[::-1]          # pre-reverse time: both directions share output row t

    # Fused gate layout along lanes: [r_f | r_b | z_f | z_b | n_f | n_b].
    gates = jnp.concatenate(
        [gi_f[..., 0:D], gi_b[..., 0:D],
         gi_f[..., D:2 * D], gi_b[..., D:2 * D],
         gi_f[..., 2 * D:3 * D], gi_b[..., 2 * D:3 * D]],
        axis=-1).astype(jnp.bfloat16)                                   # (L, B, 6D)

    # Block-diagonal recurrent weight mapping [h_f | h_b] -> fused gate layout.
    wtf = w_hh_f.T.astype(jnp.float32)      # (D, 3D) cols = [r, z, n]
    wtb = w_hh_b.T.astype(jnp.float32)
    w_fused = jnp.zeros((2 * D, 6 * D), jnp.float32)
    for g in range(3):
        w_fused = w_fused.at[:D, (2 * g) * D:(2 * g + 1) * D].set(
            wtf[:, g * D:(g + 1) * D])
        w_fused = w_fused.at[D:, (2 * g + 1) * D:(2 * g + 2) * D].set(
            wtb[:, g * D:(g + 1) * D])
    w_fused = w_fused.astype(jnp.bfloat16)

    bhn = jnp.concatenate([b_hh_f[2 * D:], b_hh_b[2 * D:]]).astype(jnp.float32)[None, :]
    return gates, w_fused, bhn


def gru_forward(x, w_ih_f, w_hh_f, b_ih_f, b_hh_f,
                w_ih_b, w_hh_b, b_ih_b, b_hh_b, *, t_blk=8):
    """Forward of the PyTorch GRU module (eval mode). x: (B, L, d_model)."""
    B, L, d_model = x.shape
    D = d_model // 2

    # view(B,L,D,2).transpose(2,3).flatten(2): de-interleave even/odd channels.
    y = x.reshape(B, L, D, 2).transpose(0, 1, 3, 2).reshape(B, L, 2 * D)

    gates, w_fused, bhn = _prepare_inputs(
        y, w_ih_f, w_hh_f, b_ih_f, b_hh_f, w_ih_b, w_hh_b, b_ih_b, b_hh_b)

    # Time blocking (pad with zero gates at the end; padded steps run after all
    # valid steps for both the forward and the pre-reversed backward chain, so
    # valid outputs are unaffected).
    t_blk = max(1, min(t_blk, L))
    Lp = _round_up(L, t_blk)
    if Lp != L:
        gates = jnp.pad(gates, ((0, Lp - L), (0, 0), (0, 0)))

    # Batch blocking: split only when divisible by the 8-sublane constraint;
    # gives the "parallel" axis real work on megacore / v7x.
    b_blk = B // 2 if (B >= 16 and B % 16 == 0) else B

    out = _gru_recurrence(gates, w_fused, bhn, x.dtype, D, t_blk, b_blk)
    out = out[:L]                                   # (L, B, 2D) = [fwd_t | bwd_{L-1-t}]

    out_f = out[:, :, :D].transpose(1, 0, 2)        # (B, L, D)
    out_b = out[::-1, :, D:].transpose(1, 0, 2)     # flip bwd half back to time order

    # view(B,L,2,D).transpose(2,3).flatten(2): interleave fwd/bwd per channel.
    z = jnp.stack([out_f, out_b], axis=-1).reshape(B, L, 2 * D)
    # TODO(synk): nn.Dropout is stochastic in training mode; identity here (eval).
    return z


# ----------------- references (for correctness validation) ------------------
def _gru_reference_fused(x, *params):
    """Scan reference that mimics the kernel's bf16/f32 numerics exactly."""
    B, L, d_model = x.shape
    D = d_model // 2
    y = x.reshape(B, L, D, 2).transpose(0, 1, 3, 2).reshape(B, L, 2 * D)
    gates, w_fused, bhn = _prepare_inputs(y, *params)

    def step(h, gi):
        gi = gi.astype(jnp.float32)
        hh = jnp.dot(h.astype(jnp.bfloat16), w_fused,
                     preferred_element_type=jnp.float32)
        rz = jax.nn.sigmoid(gi[:, :4 * D] + hh[:, :4 * D])
        r, z = rz[:, :2 * D], rz[:, 2 * D:]
        n = jnp.tanh(gi[:, 4 * D:] + r * (hh[:, 4 * D:] + bhn))
        h_new = (1.0 - z) * n + z * h
        return h_new, h_new

    _, outs = lax.scan(step, jnp.zeros((B, 2 * D), jnp.float32), gates)  # (L,B,2D)
    out_f = outs[:, :, :D].transpose(1, 0, 2)
    out_b = outs[::-1, :, D:].transpose(1, 0, 2)
    return jnp.stack([out_f, out_b], axis=-1).reshape(B, L, 2 * D)


def _gru_reference_f32(x, w_ih_f, w_hh_f, b_ih_f, b_hh_f,
                       w_ih_b, w_hh_b, b_ih_b, b_hh_b):
    """Full-f32 reference matching PyTorch nn.GRU semantics exactly."""
    B, L, d_model = x.shape
    D = d_model // 2
    y = x.reshape(B, L, D, 2).transpose(0, 1, 3, 2).reshape(B, L, 2 * D)
    yt = jnp.transpose(y, (1, 0, 2)).astype(jnp.float32)

    def run(y_seq, w_ih, w_hh, b_ih, b_hh):
        gi_all = jnp.einsum('lbi,gi->lbg', y_seq, w_ih) + b_ih

        def step(h, gi):
            hh = h @ w_hh.T + b_hh
            r = jax.nn.sigmoid(gi[:, :D] + hh[:, :D])
            z = jax.nn.sigmoid(gi[:, D:2 * D] + hh[:, D:2 * D])
            n = jnp.tanh(gi[:, 2 * D:] + r * hh[:, 2 * D:])
            h_new = (1.0 - z) * n + z * h
            return h_new, h_new

        _, outs = lax.scan(step, jnp.zeros((B, D), jnp.float32), gi_all)
        return outs

    out_f = run(yt, w_ih_f, w_hh_f, b_ih_f, b_hh_f)
    out_b = run(yt[::-1], w_ih_b, w_hh_b, b_ih_b, b_hh_b)[::-1]
    out_f = out_f.transpose(1, 0, 2)
    out_b = out_b.transpose(1, 0, 2)
    return jnp.stack([out_f, out_b], axis=-1).reshape(B, L, 2 * D)


if __name__ == "__main__":
    B, L, d_model = 2, 16, 32          # hidden per direction D = 16
    D = d_model // 2

    key = jax.random.PRNGKey(0)
    ks = jax.random.split(key, 9)
    scale = 1.0 / jnp.sqrt(jnp.float32(D))

    def init(k, shape):
        return jax.random.uniform(k, shape, jnp.float32, -scale, scale)

    x = jax.random.normal(ks[0], (B, L, d_model), jnp.float32)
    params = (init(ks[1], (3 * D, d_model)), init(ks[2], (3 * D, D)),
              init(ks[3], (3 * D,)), init(ks[4], (3 * D,)),
              init(ks[5], (3 * D, d_model)), init(ks[6], (3 * D, D)),
              init(ks[7], (3 * D,)), init(ks[8], (3 * D,)))

    out = jax.block_until_ready(gru_forward(x, *params))
    assert out.shape == (B, L, d_model)

    # Tight check vs a scan reference with identical bf16/f32 numerics.
    ref_fused = jax.block_until_ready(_gru_reference_fused(x, *params))
    err1 = float(jnp.max(jnp.abs(out - ref_fused)))
    assert err1 < 2e-3, f"mismatch vs bf16-faithful reference: {err1}"

    # Looser sanity check vs the exact full-f32 PyTorch-semantics reference
    # (bounds the bf16 gate/weight streaming error).
    ref_f32 = jax.block_until_ready(_gru_reference_f32(x, *params))
    err2 = float(jnp.max(jnp.abs(out - ref_f32)))
    assert err2 < 5e-2, f"mismatch vs f32 reference: {err2}"

    print("KERNEL_OK")
</pallas_src>

<mosaic_0001>
module attributes {stable_mosaic.version = 11 : i64} {
  func.func @kernel(%arg0: i32, %arg1: i32, %arg2: memref<8x2x96xbf16, #tpu.memory_space<vmem>>, %arg3: memref<32x96xbf16, #tpu.memory_space<vmem>>, %arg4: memref<1x32xf32, #tpu.memory_space<vmem>>, %arg5: memref<8x2x32xf32, #tpu.memory_space<vmem>>, %arg6: memref<2x32xf32, #tpu.memory_space<vmem>>) attributes {dimension_semantics = [#tpu.dimension_semantics<parallel>, #tpu.dimension_semantics<arbitrary>], iteration_bounds = array<i64: 1, 2>, scalar_prefetch = 0 : i64, scratch_operands = 1 : i64, tpu.core_type = #tpu.core_type<tc>, window_params = [{transform_indices = @transform_0, window_bounds = array<i64: 8, 2, 96>}, {pipeline_mode = #tpu.pipeline_mode<synchronous>, transform_indices = @transform_1, window_bounds = array<i64: 32, 96>}, {pipeline_mode = #tpu.pipeline_mode<synchronous>, transform_indices = @transform_2, window_bounds = array<i64: 1, 32>}, {transform_indices = @transform_3, window_bounds = array<i64: 8, 2, 32>}]} {
    %c0_i32 = arith.constant 0 : i32
    %0 = arith.cmpi eq, %arg1, %c0_i32 : i32
    %1 = arith.extui %0 : i1 to i32
    %c0_i32_0 = arith.constant 0 : i32
    %2 = arith.cmpi ne, %1, %c0_i32_0 : i32
    scf.if %2 {
      %cst_64 = arith.constant 0.000000e+00 : f32
      %263 = vector.broadcast %cst_64 : f32 to vector<2x32xf32>
      %c0_65 = arith.constant 0 : index
      %c0_66 = arith.constant 0 : index
      %264 = vector.load %arg6[%c0_65, %c0_66] : memref<2x32xf32, #tpu.memory_space<vmem>>, vector<2x32xf32>
      tpu.vector_store %arg6[%c0_65, %c0_66], %263 {strides = array<i32>} : memref<2x32xf32, #tpu.memory_space<vmem>>, vector<2x32xf32>,
    } else {
    }
    %c0 = arith.constant 0 : index
    %c0_1 = arith.constant 0 : index
    %3 = vector.load %arg3[%c0, %c0_1] : memref<32x96xbf16, #tpu.memory_space<vmem>>, vector<32x96xbf16>
    %c0_2 = arith.constant 0 : index
    %c0_3 = arith.constant 0 : index
    %4 = vector.load %arg4[%c0_2, %c0_3] : memref<1x32xf32, #tpu.memory_space<vmem>>, vector<1x32xf32>
    %c0_4 = arith.constant 0 : index
    %c0_5 = arith.constant 0 : index
    %5 = vector.load %arg6[%c0_4, %c0_5] : memref<2x32xf32, #tpu.memory_space<vmem>>, vector<2x32xf32>
    %c0_i32_6 = arith.constant 0 : i32
    %6 = arith.index_cast %c0_i32_6 : i32 to index
    %c0_7 = arith.constant 0 : index
    %c0_8 = arith.constant 0 : index
    %7 = vector.load %arg2[%6, %c0_7, %c0_8] : memref<8x2x96xbf16, #tpu.memory_space<vmem>>, vector<1x2x96xbf16>
    %8 = vector.shape_cast %7 : vector<1x2x96xbf16> to vector<2x96xbf16>
    %9 = arith.extf %8 : vector<2x96xbf16> to vector<2x96xf32>
    %10 = arith.truncf %5 : vector<2x32xf32> to vector<2x32xbf16>
    %cst = arith.constant dense<0.000000e+00> : vector<2x96xf32>
    %11 = tpu.matmul %10, %3, %cst {dimension_numbers = #tpu.dot_dimension_numbers<[1], [0], [0], [1], [0, 0, 1, 1], [], []>} : vector<2x32xbf16>, vector<32x96xbf16>, vector<2x96xf32> -> vector<2x96xf32>
    %12 = vector.extract_strided_slice %9 {offsets = [0, 0], sizes = [2, 64], strides = [1, 1]} : vector<2x96xf32> to vector<2x64xf32>
    %13 = vector.extract_strided_slice %11 {offsets = [0, 0], sizes = [2, 64], strides = [1, 1]} : vector<2x96xf32> to vector<2x64xf32>
    %14 = arith.addf %12, %13 : vector<2x64xf32>
    %15 = arith.negf %14 : vector<2x64xf32>
    %16 = math.exp %15 : vector<2x64xf32>
    %cst_9 = arith.constant 1.000000e+00 : f32
    %17 = vector.broadcast %cst_9 : f32 to vector<2x64xf32>
    %18 = arith.addf %17, %16 : vector<2x64xf32>
    %19 = arith.divf %17, %18 : vector<2x64xf32>
    %20 = vector.extract_strided_slice %19 {offsets = [0, 0], sizes = [2, 32], strides = [1, 1]} : vector<2x64xf32> to vector<2x32xf32>
    %21 = vector.extract_strided_slice %19 {offsets = [0, 32], sizes = [2, 32], strides = [1, 1]} : vector<2x64xf32> to vector<2x32xf32>
    %22 = vector.extract_strided_slice %9 {offsets = [0, 64], sizes = [2, 32], strides = [1, 1]} : vector<2x96xf32> to vector<2x32xf32>
    %23 = vector.extract_strided_slice %11 {offsets = [0, 64], sizes = [2, 32], strides = [1, 1]} : vector<2x96xf32> to vector<2x32xf32>
    %24 = vector.broadcast %4 : vector<1x32xf32> to vector<2x32xf32>
    %25 = arith.addf %23, %24 : vector<2x32xf32>
    %26 = arith.mulf %20, %25 : vector<2x32xf32>
    %27 = arith.addf %22, %26 : vector<2x32xf32>
    %28 = math.tanh %27 : vector<2x32xf32>
    %cst_10 = arith.constant 1.000000e+00 : f32
    %29 = vector.broadcast %cst_10 : f32 to vector<2x32xf32>
    %30 = arith.subf %29, %21 : vector<2x32xf32>
    %31 = arith.mulf %30, %28 : vector<2x32xf32>
    %32 = arith.mulf %21, %5 : vector<2x32xf32>
    %33 = arith.addf %31, %32 : vector<2x32xf32>
    %34 = arith.index_cast %c0_i32_6 : i32 to index
    %c0_11 = arith.constant 0 : index
    %c0_12 = arith.constant 0 : index
    %35 = vector.load %arg5[%34, %c0_11, %c0_12] : memref<8x2x32xf32, #tpu.memory_space<vmem>>, vector<1x2x32xf32>
    %36 = vector.shape_cast %35 : vector<1x2x32xf32> to vector<2x32xf32>
    %37 = vector.shape_cast %33 : vector<2x32xf32> to vector<1x2x32xf32>
    tpu.vector_store %arg5[%34, %c0_11, %c0_12], %37 {strides = array<i32>} : memref<8x2x32xf32, #tpu.memory_space<vmem>>, vector<1x2x32xf32>,
    %c1_i32 = arith.constant 1 : i32
    %38 = arith.index_cast %c1_i32 : i32 to index
    %c0_13 = arith.constant 0 : index
    %c0_14 = arith.constant 0 : index
    %39 = vector.load %arg2[%38, %c0_13, %c0_14] : memref<8x2x96xbf16, #tpu.memory_space<vmem>>, vector<1x2x96xbf16>
    %40 = vector.shape_cast %39 : vector<1x2x96xbf16> to vector<2x96xbf16>
    %41 = arith.extf %40 : vector<2x96xbf16> to vector<2x96xf32>
    %42 = arith.truncf %33 : vector<2x32xf32> to vector<2x32xbf16>
    %cst_15 = arith.constant dense<0.000000e+00> : vector<2x96xf32>
    %43 = tpu.matmul %42, %3, %cst_15 {dimension_numbers = #tpu.dot_dimension_numbers<[1], [0], [0], [1], [0, 0, 1, 1], [], []>} : vector<2x32xbf16>, vector<32x96xbf16>, vector<2x96xf32> -> vector<2x96xf32>
    %44 = vector.extract_strided_slice %41 {offsets = [0, 0], sizes = [2, 64], strides = [1, 1]} : vector<2x96xf32> to vector<2x64xf32>
    %45 = vector.extract_strided_slice %43 {offsets = [0, 0], sizes = [2, 64], strides = [1, 1]} : vector<2x96xf32> to vector<2x64xf32>
    %46 = arith.addf %44, %45 : vector<2x64xf32>
    %47 = arith.negf %46 : vector<2x64xf32>
    %48 = math.exp %47 : vector<2x64xf32>
    %cst_16 = arith.constant 1.000000e+00 : f32
    %49 = vector.broadcast %cst_16 : f32 to vector<2x64xf32>
    %50 = arith.addf %49, %48 : vector<2x64xf32>
    %51 = arith.divf %49, %50 : vector<2x64xf32>
    %52 = vector.extract_strided_slice %51 {offsets = [0, 0], sizes = [2, 32], strides = [1, 1]} : vector<2x64xf32> to vector<2x32xf32>
    %53 = vector.extract_strided_slice %51 {offsets = [0, 32], sizes = [2, 32], strides = [1, 1]} : vector<2x64xf32> to vector<2x32xf32>
    %54 = vector.extract_strided_slice %41 {offsets = [0, 64], sizes = [2, 32], strides = [1, 1]} : vector<2x96xf32> to vector<2x32xf32>
    %55 = vector.extract_strided_slice %43 {offsets = [0, 64], sizes = [2, 32], strides = [1, 1]} : vector<2x96xf32> to vector<2x32xf32>
    %56 = vector.broadcast %4 : vector<1x32xf32> to vector<2x32xf32>
    %57 = arith.addf %55, %56 : vector<2x32xf32>
    %58 = arith.mulf %52, %57 : vector<2x32xf32>
    %59 = arith.addf %54, %58 : vector<2x32xf32>
    %60 = math.tanh %59 : vector<2x32xf32>
    %cst_17 = arith.constant 1.000000e+00 : f32
    %61 = vector.broadcast %cst_17 : f32 to vector<2x32xf32>
    %62 = arith.subf %61, %53 : vector<2x32xf32>
    %63 = arith.mulf %62, %60 : vector<2x32xf32>
    %64 = arith.mulf %53, %33 : vector<2x32xf32>
    %65 = arith.addf %63, %64 : vector<2x32xf32>
    %66 = arith.index_cast %c1_i32 : i32 to index
    %c0_18 = arith.constant 0 : index
    %c0_19 = arith.constant 0 : index
    %67 = vector.load %arg5[%66, %c0_18, %c0_19] : memref<8x2x32xf32, #tpu.memory_space<vmem>>, vector<1x2x32xf32>
    %68 = vector.shape_cast %67 : vector<1x2x32xf32> to vector<2x32xf32>
    %69 = vector.shape_cast %65 : vector<2x32xf32> to vector<1x2x32xf32>
    tpu.vector_store %arg5[%66, %c0_18, %c0_19], %69 {strides = array<i32>} : memref<8x2x32xf32, #tpu.memory_space<vmem>>, vector<1x2x32xf32>,
    %c2_i32 = arith.constant 2 : i32
    %70 = arith.index_cast %c2_i32 : i32 to index
    %c0_20 = arith.constant 0 : index
    %c0_21 = arith.constant 0 : index
    %71 = vector.load %arg2[%70, %c0_20, %c0_21] : memref<8x2x96xbf16, #tpu.memory_space<vmem>>, vector<1x2x96xbf16>
    %72 = vector.shape_cast %71 : vector<1x2x96xbf16> to vector<2x96xbf16>
    %73 = arith.extf %72 : vector<2x96xbf16> to vector<2x96xf32>
    %74 = arith.truncf %65 : vector<2x32xf32> to vector<2x32xbf16>
    %cst_22 = arith.constant dense<0.000000e+00> : vector<2x96xf32>
    %75 = tpu.matmul %74, %3, %cst_22 {dimension_numbers = #tpu.dot_dimension_numbers<[1], [0], [0], [1], [0, 0, 1, 1], [], []>} : vector<2x32xbf16>, vector<32x96xbf16>, vector<2x96xf32> -> vector<2x96xf32>
    %76 = vector.extract_strided_slice %73 {offsets = [0, 0], sizes = [2, 64], strides = [1, 1]} : vector<2x96xf32> to vector<2x64xf32>
    %77 = vector.extract_strided_slice %75 {offsets = [0, 0], sizes = [2, 64], strides = [1, 1]} : vector<2x96xf32> to vector<2x64xf32>
    %78 = arith.addf %76, %77 : vector<2x64xf32>
    %79 = arith.negf %78 : vector<2x64xf32>
    %80 = math.exp %79 : vector<2x64xf32>
    %cst_23 = arith.constant 1.000000e+00 : f32
    %81 = vector.broadcast %cst_23 : f32 to vector<2x64xf32>
    %82 = arith.addf %81, %80 : vector<2x64xf32>
    %83 = arith.divf %81, %82 : vector<2x64xf32>
    %84 = vector.extract_strided_slice %83 {offsets = [0, 0], sizes = [2, 32], strides = [1, 1]} : vector<2x64xf32> to vector<2x32xf32>
    %85 = vector.extract_strided_slice %83 {offsets = [0, 32], sizes = [2, 32], strides = [1, 1]} : vector<2x64xf32> to vector<2x32xf32>
    %86 = vector.extract_strided_slice %73 {offsets = [0, 64], sizes = [2, 32], strides = [1, 1]} : vector<2x96xf32> to vector<2x32xf32>
    %87 = vector.extract_strided_slice %75 {offsets = [0, 64], sizes = [2, 32], strides = [1, 1]} : vector<2x96xf32> to vector<2x32xf32>
    %88 = vector.broadcast %4 : vector<1x32xf32> to vector<2x32xf32>
    %89 = arith.addf %87, %88 : vector<2x32xf32>
    %90 = arith.mulf %84, %89 : vector<2x32xf32>
    %91 = arith.addf %86, %90 : vector<2x32xf32>
    %92 = math.tanh %91 : vector<2x32xf32>
    %cst_24 = arith.constant 1.000000e+00 : f32
    %93 = vector.broadcast %cst_24 : f32 to vector<2x32xf32>
    %94 = arith.subf %93, %85 : vector<2x32xf32>
    %95 = arith.mulf %94, %92 : vector<2x32xf32>
    %96 = arith.mulf %85, %65 : vector<2x32xf32>
    %97 = arith.addf %95, %96 : vector<2x32xf32>
    %98 = arith.index_cast %c2_i32 : i32 to index
    %c0_25 = arith.constant 0 : index
    %c0_26 = arith.constant 0 : index
    %99 = vector.load %arg5[%98, %c0_25, %c0_26] : memref<8x2x32xf32, #tpu.memory_space<vmem>>, vector<1x2x32xf32>
    %100 = vector.shape_cast %99 : vector<1x2x32xf32> to vector<2x32xf32>
    %101 = vector.shape_cast %97 : vector<2x32xf32> to vector<1x2x32xf32>
    tpu.vector_store %arg5[%98, %c0_25, %c0_26], %101 {strides = array<i32>} : memref<8x2x32xf32, #tpu.memory_space<vmem>>, vector<1x2x32xf32>,
    %c3_i32 = arith.constant 3 : i32
    %102 = arith.index_cast %c3_i32 : i32 to index
    %c0_27 = arith.constant 0 : index
    %c0_28 = arith.constant 0 : index
    %103 = vector.load %arg2[%102, %c0_27, %c0_28] : memref<8x2x96xbf16, #tpu.memory_space<vmem>>, vector<1x2x96xbf16>
    %104 = vector.shape_cast %103 : vector<1x2x96xbf16> to vector<2x96xbf16>
    %105 = arith.extf %104 : vector<2x96xbf16> to vector<2x96xf32>
    %106 = arith.truncf %97 : vector<2x32xf32> to vector<2x32xbf16>
    %cst_29 = arith.constant dense<0.000000e+00> : vector<2x96xf32>
    %107 = tpu.matmul %106, %3, %cst_29 {dimension_numbers = #tpu.dot_dimension_numbers<[1], [0], [0], [1], [0, 0, 1, 1], [], []>} : vector<2x32xbf16>, vector<32x96xbf16>, vector<2x96xf32> -> vector<2x96xf32>
    %108 = vector.extract_strided_slice %105 {offsets = [0, 0], sizes = [2, 64], strides = [1, 1]} : vector<2x96xf32> to vector<2x64xf32>
    %109 = vector.extract_strided_slice %107 {offsets = [0, 0], sizes = [2, 64], strides = [1, 1]} : vector<2x96xf32> to vector<2x64xf32>
    %110 = arith.addf %108, %109 : vector<2x64xf32>
    %111 = arith.negf %110 : vector<2x64xf32>
    %112 = math.exp %111 : vector<2x64xf32>
    %cst_30 = arith.constant 1.000000e+00 : f32
    %113 = vector.broadcast %cst_30 : f32 to vector<2x64xf32>
    %114 = arith.addf %113, %112 : vector<2x64xf32>
    %115 = arith.divf %113, %114 : vector<2x64xf32>
    %116 = vector.extract_strided_slice %115 {offsets = [0, 0], sizes = [2, 32], strides = [1, 1]} : vector<2x64xf32> to vector<2x32xf32>
    %117 = vector.extract_strided_slice %115 {offsets = [0, 32], sizes = [2, 32], strides = [1, 1]} : vector<2x64xf32> to vector<2x32xf32>
    %118 = vector.extract_strided_slice %105 {offsets = [0, 64], sizes = [2, 32], strides = [1, 1]} : vector<2x96xf32> to vector<2x32xf32>
    %119 = vector.extract_strided_slice %107 {offsets = [0, 64], sizes = [2, 32], strides = [1, 1]} : vector<2x96xf32> to vector<2x32xf32>
    %120 = vector.broadcast %4 : vector<1x32xf32> to vector<2x32xf32>
    %121 = arith.addf %119, %120 : vector<2x32xf32>
    %122 = arith.mulf %116, %121 : vector<2x32xf32>
    %123 = arith.addf %118, %122 : vector<2x32xf32>
    %124 = math.tanh %123 : vector<2x32xf32>
    %cst_31 = arith.constant 1.000000e+00 : f32
    %125 = vector.broadcast %cst_31 : f32 to vector<2x32xf32>
    %126 = arith.subf %125, %117 : vector<2x32xf32>
    %127 = arith.mulf %126, %124 : vector<2x32xf32>
    %128 = arith.mulf %117, %97 : vector<2x32xf32>
    %129 = arith.addf %127, %128 : vector<2x32xf32>
    %130 = arith.index_cast %c3_i32 : i32 to index
    %c0_32 = arith.constant 0 : index
    %c0_33 = arith.constant 0 : index
    %131 = vector.load %arg5[%130, %c0_32, %c0_33] : memref<8x2x32xf32, #tpu.memory_space<vmem>>, vector<1x2x32xf32>
    %132 = vector.shape_cast %131 : vector<1x2x32xf32> to vector<2x32xf32>
    %133 = vector.shape_cast %129 : vector<2x32xf32> to vector<1x2x32xf32>
    tpu.vector_store %arg5[%130, %c0_32, %c0_33], %133 {strides = array<i32>} : memref<8x2x32xf32, #tpu.memory_space<vmem>>, vector<1x2x32xf32>,
    %c4_i32 = arith.constant 4 : i32
    %134 = arith.index_cast %c4_i32 : i32 to index
    %c0_34 = arith.constant 0 : index
    %c0_35 = arith.constant 0 : index
    %135 = vector.load %arg2[%134, %c0_34, %c0_35] : memref<8x2x96xbf16, #tpu.memory_space<vmem>>, vector<1x2x96xbf16>
    %136 = vector.shape_cast %135 : vector<1x2x96xbf16> to vector<2x96xbf16>
    %137 = arith.extf %136 : vector<2x96xbf16> to vector<2x96xf32>
    %138 = arith.truncf %129 : vector<2x32xf32> to vector<2x32xbf16>
    %cst_36 = arith.constant dense<0.000000e+00> : vector<2x96xf32>
    %139 = tpu.matmul %138, %3, %cst_36 {dimension_numbers = #tpu.dot_dimension_numbers<[1], [0], [0], [1], [0, 0, 1, 1], [], []>} : vector<2x32xbf16>, vector<32x96xbf16>, vector<2x96xf32> -> vector<2x96xf32>
    %140 = vector.extract_strided_slice %137 {offsets = [0, 0], sizes = [2, 64], strides = [1, 1]} : vector<2x96xf32> to vector<2x64xf32>
    %141 = vector.extract_strided_slice %139 {offsets = [0, 0], sizes = [2, 64], strides = [1, 1]} : vector<2x96xf32> to vector<2x64xf32>
    %142 = arith.addf %140, %141 : vector<2x64xf32>
    %143 = arith.negf %142 : vector<2x64xf32>
    %144 = math.exp %143 : vector<2x64xf32>
    %cst_37 = arith.constant 1.000000e+00 : f32
    %145 = vector.broadcast %cst_37 : f32 to vector<2x64xf32>
    %146 = arith.addf %145, %144 : vector<2x64xf32>
    %147 = arith.divf %145, %146 : vector<2x64xf32>
    %148 = vector.extract_strided_slice %147 {offsets = [0, 0], sizes = [2, 32], strides = [1, 1]} : vector<2x64xf32> to vector<2x32xf32>
    %149 = vector.extract_strided_slice %147 {offsets = [0, 32], sizes = [2, 32], strides = [1, 1]} : vector<2x64xf32> to vector<2x32xf32>
    %150 = vector.extract_strided_slice %137 {offsets = [0, 64], sizes = [2, 32], strides = [1, 1]} : vector<2x96xf32> to vector<2x32xf32>
    %151 = vector.extract_strided_slice %139 {offsets = [0, 64], sizes = [2, 32], strides = [1, 1]} : vector<2x96xf32> to vector<2x32xf32>
    %152 = vector.broadcast %4 : vector<1x32xf32> to vector<2x32xf32>
    %153 = arith.addf %151, %152 : vector<2x32xf32>
    %154 = arith.mulf %148, %153 : vector<2x32xf32>
    %155 = arith.addf %150, %154 : vector<2x32xf32>
    %156 = math.tanh %155 : vector<2x32xf32>
    %cst_38 = arith.constant 1.000000e+00 : f32
    %157 = vector.broadcast %cst_38 : f32 to vector<2x32xf32>
    %158 = arith.subf %157, %149 : vector<2x32xf32>
    %159 = arith.mulf %158, %156 : vector<2x32xf32>
    %160 = arith.mulf %149, %129 : vector<2x32xf32>
    %161 = arith.addf %159, %160 : vector<2x32xf32>
    %162 = arith.index_cast %c4_i32 : i32 to index
    %c0_39 = arith.constant 0 : index
    %c0_40 = arith.constant 0 : index
    %163 = vector.load %arg5[%162, %c0_39, %c0_40] : memref<8x2x32xf32, #tpu.memory_space<vmem>>, vector<1x2x32xf32>
    %164 = vector.shape_cast %163 : vector<1x2x32xf32> to vector<2x32xf32>
    %165 = vector.shape_cast %161 : vector<2x32xf32> to vector<1x2x32xf32>
    tpu.vector_store %arg5[%162, %c0_39, %c0_40], %165 {strides = array<i32>} : memref<8x2x32xf32, #tpu.memory_space<vmem>>, vector<1x2x32xf32>,
    %c5_i32 = arith.constant 5 : i32
    %166 = arith.index_cast %c5_i32 : i32 to index
    %c0_41 = arith.constant 0 : index
    %c0_42 = arith.constant 0 : index
    %167 = vector.load %arg2[%166, %c0_41, %c0_42] : memref<8x2x96xbf16, #tpu.memory_space<vmem>>, vector<1x2x96xbf16>
    %168 = vector.shape_cast %167 : vector<1x2x96xbf16> to vector<2x96xbf16>
    %169 = arith.extf %168 : vector<2x96xbf16> to vector<2x96xf32>
    %170 = arith.truncf %161 : vector<2x32xf32> to vector<2x32xbf16>
    %cst_43 = arith.constant dense<0.000000e+00> : vector<2x96xf32>
    %171 = tpu.matmul %170, %3, %cst_43 {dimension_numbers = #tpu.dot_dimension_numbers<[1], [0], [0], [1], [0, 0, 1, 1], [], []>} : vector<2x32xbf16>, vector<32x96xbf16>, vector<2x96xf32> -> vector<2x96xf32>
    %172 = vector.extract_strided_slice %169 {offsets = [0, 0], sizes = [2, 64], strides = [1, 1]} : vector<2x96xf32> to vector<2x64xf32>
    %173 = vector.extract_strided_slice %171 {offsets = [0, 0], sizes = [2, 64], strides = [1, 1]} : vector<2x96xf32> to vector<2x64xf32>
    %174 = arith.addf %172, %173 : vector<2x64xf32>
    %175 = arith.negf %174 : vector<2x64xf32>
    %176 = math.exp %175 : vector<2x64xf32>
    %cst_44 = arith.constant 1.000000e+00 : f32
    %177 = vector.broadcast %cst_44 : f32 to vector<2x64xf32>
    %178 = arith.addf %177, %176 : vector<2x64xf32>
    %179 = arith.divf %177, %178 : vector<2x64xf32>
    %180 = vector.extract_strided_slice %179 {offsets = [0, 0], sizes = [2, 32], strides = [1, 1]} : vector<2x64xf32> to vector<2x32xf32>
    %181 = vector.extract_strided_slice %179 {offsets = [0, 32], sizes = [2, 32], strides = [1, 1]} : vector<2x64xf32> to vector<2x32xf32>
    %182 = vector.extract_strided_slice %169 {offsets = [0, 64], sizes = [2, 32], strides = [1, 1]} : vector<2x96xf32> to vector<2x32xf32>
    %183 = vector.extract_strided_slice %171 {offsets = [0, 64], sizes = [2, 32], strides = [1, 1]} : vector<2x96xf32> to vector<2x32xf32>
    %184 = vector.broadcast %4 : vector<1x32xf32> to vector<2x32xf32>
    %185 = arith.addf %183, %184 : vector<2x32xf32>
    %186 = arith.mulf %180, %185 : vector<2x32xf32>
    %187 = arith.addf %182, %186 : vector<2x32xf32>
    %188 = math.tanh %187 : vector<2x32xf32>
    %cst_45 = arith.constant 1.000000e+00 : f32
    %189 = vector.broadcast %cst_45 : f32 to vector<2x32xf32>
    %190 = arith.subf %189, %181 : vector<2x32xf32>
    %191 = arith.mulf %190, %188 : vector<2x32xf32>
    %192 = arith.mulf %181, %161 : vector<2x32xf32>
    %193 = arith.addf %191, %192 : vector<2x32xf32>
    %194 = arith.index_cast %c5_i32 : i32 to index
    %c0_46 = arith.constant 0 : index
    %c0_47 = arith.constant 0 : index
    %195 = vector.load %arg5[%194, %c0_46, %c0_47] : memref<8x2x32xf32, #tpu.memory_space<vmem>>, vector<1x2x32xf32>
    %196 = vector.shape_cast %195 : vector<1x2x32xf32> to vector<2x32xf32>
    %197 = vector.shape_cast %193 : vector<2x32xf32> to vector<1x2x32xf32>
    tpu.vector_store %arg5[%194, %c0_46, %c0_47], %197 {strides = array<i32>} : memref<8x2x32xf32, #tpu.memory_space<vmem>>, vector<1x2x32xf32>,
    %c6_i32 = arith.constant 6 : i32
    %198 = arith.index_cast %c6_i32 : i32 to index
    %c0_48 = arith.constant 0 : index
    %c0_49 = arith.constant 0 : index
    %199 = vector.load %arg2[%198, %c0_48, %c0_49] : memref<8x2x96xbf16, #tpu.memory_space<vmem>>, vector<1x2x96xbf16>
    %200 = vector.shape_cast %199 : vector<1x2x96xbf16> to vector<2x96xbf16>
    %201 = arith.extf %200 : vector<2x96xbf16> to vector<2x96xf32>
    %202 = arith.truncf %193 : vector<2x32xf32> to vector<2x32xbf16>
    %cst_50 = arith.constant dense<0.000000e+00> : vector<2x96xf32>
    %203 = tpu.matmul %202, %3, %cst_50 {dimension_numbers = #tpu.dot_dimension_numbers<[1], [0], [0], [1], [0, 0, 1, 1], [], []>} : vector<2x32xbf16>, vector<32x96xbf16>, vector<2x96xf32> -> vector<2x96xf32>
    %204 = vector.extract_strided_slice %201 {offsets = [0, 0], sizes = [2, 64], strides = [1, 1]} : vector<2x96xf32> to vector<2x64xf32>
    %205 = vector.extract_strided_slice %203 {offsets = [0, 0], sizes = [2, 64], strides = [1, 1]} : vector<2x96xf32> to vector<2x64xf32>
    %206 = arith.addf %204, %205 : vector<2x64xf32>
    %207 = arith.negf %206 : vector<2x64xf32>
    %208 = math.exp %207 : vector<2x64xf32>
    %cst_51 = arith.constant 1.000000e+00 : f32
    %209 = vector.broadcast %cst_51 : f32 to vector<2x64xf32>
    %210 = arith.addf %209, %208 : vector<2x64xf32>
    %211 = arith.divf %209, %210 : vector<2x64xf32>
    %212 = vector.extract_strided_slice %211 {offsets = [0, 0], sizes = [2, 32], strides = [1, 1]} : vector<2x64xf32> to vector<2x32xf32>
    %213 = vector.extract_strided_slice %211 {offsets = [0, 32], sizes = [2, 32], strides = [1, 1]} : vector<2x64xf32> to vector<2x32xf32>
    %214 = vector.extract_strided_slice %201 {offsets = [0, 64], sizes = [2, 32], strides = [1, 1]} : vector<2x96xf32> to vector<2x32xf32>
    %215 = vector.extract_strided_slice %203 {offsets = [0, 64], sizes = [2, 32], strides = [1, 1]} : vector<2x96xf32> to vector<2x32xf32>
    %216 = vector.broadcast %4 : vector<1x32xf32> to vector<2x32xf32>
    %217 = arith.addf %215, %216 : vector<2x32xf32>
    %218 = arith.mulf %212, %217 : vector<2x32xf32>
    %219 = arith.addf %214, %218 : vector<2x32xf32>
    %220 = math.tanh %219 : vector<2x32xf32>
    %cst_52 = arith.constant 1.000000e+00 : f32
    %221 = vector.broadcast %cst_52 : f32 to vector<2x32xf32>
    %222 = arith.subf %221, %213 : vector<2x32xf32>
    %223 = arith.mulf %222, %220 : vector<2x32xf32>
    %224 = arith.mulf %213, %193 : vector<2x32xf32>
    %225 = arith.addf %223, %224 : vector<2x32xf32>
    %226 = arith.index_cast %c6_i32 : i32 to index
    %c0_53 = arith.constant 0 : index
    %c0_54 = arith.constant 0 : index
    %227 = vector.load %arg5[%226, %c0_53, %c0_54] : memref<8x2x32xf32, #tpu.memory_space<vmem>>, vector<1x2x32xf32>
    %228 = vector.shape_cast %227 : vector<1x2x32xf32> to vector<2x32xf32>
    %229 = vector.shape_cast %225 : vector<2x32xf32> to vector<1x2x32xf32>
    tpu.vector_store %arg5[%226, %c0_53, %c0_54], %229 {strides = array<i32>} : memref<8x2x32xf32, #tpu.memory_space<vmem>>, vector<1x2x32xf32>,
    %c7_i32 = arith.constant 7 : i32
    %230 = arith.index_cast %c7_i32 : i32 to index
    %c0_55 = arith.constant 0 : index
    %c0_56 = arith.constant 0 : index
    %231 = vector.load %arg2[%230, %c0_55, %c0_56] : memref<8x2x96xbf16, #tpu.memory_space<vmem>>, vector<1x2x96xbf16>
    %232 = vector.shape_cast %231 : vector<1x2x96xbf16> to vector<2x96xbf16>
    %233 = arith.extf %232 : vector<2x96xbf16> to vector<2x96xf32>
    %234 = arith.truncf %225 : vector<2x32xf32> to vector<2x32xbf16>
    %cst_57 = arith.constant dense<0.000000e+00> : vector<2x96xf32>
    %235 = tpu.matmul %234, %3, %cst_57 {dimension_numbers = #tpu.dot_dimension_numbers<[1], [0], [0], [1], [0, 0, 1, 1], [], []>} : vector<2x32xbf16>, vector<32x96xbf16>, vector<2x96xf32> -> vector<2x96xf32>
    %236 = vector.extract_strided_slice %233 {offsets = [0, 0], sizes = [2, 64], strides = [1, 1]} : vector<2x96xf32> to vector<2x64xf32>
    %237 = vector.extract_strided_slice %235 {offsets = [0, 0], sizes = [2, 64], strides = [1, 1]} : vector<2x96xf32> to vector<2x64xf32>
    %238 = arith.addf %236, %237 : vector<2x64xf32>
    %239 = arith.negf %238 : vector<2x64xf32>
    %240 = math.exp %239 : vector<2x64xf32>
    %cst_58 = arith.constant 1.000000e+00 : f32
    %241 = vector.broadcast %cst_58 : f32 to vector<2x64xf32>
    %242 = arith.addf %241, %240 : vector<2x64xf32>
    %243 = arith.divf %241, %242 : vector<2x64xf32>
    %244 = vector.extract_strided_slice %243 {offsets = [0, 0], sizes = [2, 32], strides = [1, 1]} : vector<2x64xf32> to vector<2x32xf32>
    %245 = vector.extract_strided_slice %243 {offsets = [0, 32], sizes = [2, 32], strides = [1, 1]} : vector<2x64xf32> to vector<2x32xf32>
    %246 = vector.extract_strided_slice %233 {offsets = [0, 64], sizes = [2, 32], strides = [1, 1]} : vector<2x96xf32> to vector<2x32xf32>
    %247 = vector.extract_strided_slice %235 {offsets = [0, 64], sizes = [2, 32], strides = [1, 1]} : vector<2x96xf32> to vector<2x32xf32>
    %248 = vector.broadcast %4 : vector<1x32xf32> to vector<2x32xf32>
    %249 = arith.addf %247, %248 : vector<2x32xf32>
    %250 = arith.mulf %244, %249 : vector<2x32xf32>
    %251 = arith.addf %246, %250 : vector<2x32xf32>
    %252 = math.tanh %251 : vector<2x32xf32>
    %cst_59 = arith.constant 1.000000e+00 : f32
    %253 = vector.broadcast %cst_59 : f32 to vector<2x32xf32>
    %254 = arith.subf %253, %245 : vector<2x32xf32>
    %255 = arith.mulf %254, %252 : vector<2x32xf32>
    %256 = arith.mulf %245, %225 : vector<2x32xf32>
    %257 = arith.addf %255, %256 : vector<2x32xf32>
    %258 = arith.index_cast %c7_i32 : i32 to index
    %c0_60 = arith.constant 0 : index
    %c0_61 = arith.constant 0 : index
    %259 = vector.load %arg5[%258, %c0_60, %c0_61] : memref<8x2x32xf32, #tpu.memory_space<vmem>>, vector<1x2x32xf32>
    %260 = vector.shape_cast %259 : vector<1x2x32xf32> to vector<2x32xf32>
    %261 = vector.shape_cast %257 : vector<2x32xf32> to vector<1x2x32xf32>
    tpu.vector_store %arg5[%258, %c0_60, %c0_61], %261 {strides = array<i32>} : memref<8x2x32xf32, #tpu.memory_space<vmem>>, vector<1x2x32xf32>,
    %c8_i32 = arith.constant 8 : i32
    %c0_62 = arith.constant 0 : index
    %c0_63 = arith.constant 0 : index
    %262 = vector.load %arg6[%c0_62, %c0_63] : memref<2x32xf32, #tpu.memory_space<vmem>>, vector<2x32xf32>
    tpu.vector_store %arg6[%c0_62, %c0_63], %257 {strides = array<i32>} : memref<2x32xf32, #tpu.memory_space<vmem>>, vector<2x32xf32>,
    return
  }
  func.func @transform_0(%arg0: i32, %arg1: i32) -> (i32, i32, i32) {
    %c0_i32 = arith.constant 0 : i32
    %c0_i32_0 = arith.constant 0 : i32
    return %arg1, %arg0, %c0_i32 : i32, i32, i32
  }
  func.func @transform_1(%arg0: i32, %arg1: i32) -> (i32, i32) {
    %c0_i32 = arith.constant 0 : i32
    %c0_i32_0 = arith.constant 0 : i32
    %c0_i32_1 = arith.constant 0 : i32
    return %c0_i32, %c0_i32_0 : i32, i32
  }
  func.func @transform_2(%arg0: i32, %arg1: i32) -> (i32, i32) {
    %c0_i32 = arith.constant 0 : i32
    %c0_i32_0 = arith.constant 0 : i32
    %c0_i32_1 = arith.constant 0 : i32
    return %c0_i32, %c0_i32_0 : i32, i32
  }
  func.func @transform_3(%arg0: i32, %arg1: i32) -> (i32, i32, i32) {
    %c0_i32 = arith.constant 0 : i32
    %c0_i32_0 = arith.constant 0 : i32
    return %arg1, %arg0, %c0_i32 : i32, i32, i32
  }
}

</mosaic_0001>

<bundles_post_ra>
// kernel: tpu_custom_call.1
= control target key start
LH: loop header
LB: loop body
LE: loop exit
PB: predicated region body
PF: predicated region fallthrough
CT: control target
= control target key end

     0   :  { %8 = vsyncpa [#allocation4], 0  ;;  %s2030_s0 = inlined_call_operand.hbm [shape: bf16[16,2,96], index: 0, kind: input, shape index: {}]   ;;  %s2031_s1 = inlined_call_operand.hbm [shape: bf16[32,96], index: 1, kind: input, shape index: {}]   ;;  %s2032_s2 = inlined_call_operand.vmem [shape: f32[1,32], index: 2, kind: input, shape index: {}]   ;;  %s2033_s3 = inlined_call_operand.hbm [shape: f32[16,2,32], index: 3, kind: output, shape index: {}]  }
   0x1   :  { %10 = vsyncpa [#allocation4 + $0x1], 0 }
   0x2   :  { %11 = vsyncpa [#allocation7], 0 }
   0x3   :  { %12 = vsyncpa [#allocation5], 0 }
   0x4   :  { %14 = vsyncpa [#allocation5 + $0x1], 0  ;;  %s1608_s12 = smov 0   ;;  %s1610_s13 = smov 0  }
   0x5   :  { %s1612_s14 = smov 0   ;;  %s1614_s15 = smov 0  }
   0x6   :  { %s1616_s16 = smov 0   ;;  %s1618_s17 = smov 0  }
   0x7 LB: > { %s1151_s18 = sadd.s32 4294967295, %s1571_s17   ;;  %s1152_s19 = sadd.s32 4294967294, %s1571_s17   ;;  %s1571_s17 = sphi %s1618_s17, %s20_s17   ;;  %s1567_s16 = sphi %s1616_s16, %s2057_s16   ;;  %s1563_s15 = sphi %s1614_s15, %s2056_s15   ;;  %s1559_s14 = sphi %s1612_s14, %s2055_s14   ;;  %s1555_s13 = sphi %s1610_s13, %s2054_s13   ;;  %s1551_s12 = sphi %s1608_s12, %s2053_s12  }
   0x8   : > { %p54_p0 = scmp.ne.s32.totalorder %s1555_s13, %s1551_s12  ;;  %p1642_p1 = scmp.eq.s32.totalorder %s1151_s18, 0 }
   0x9   : > { %p1646_p2 = scmp.eq.s32.totalorder %s1151_s18, 1  ;;  %p128_p3 = scmp.eq.s32.totalorder %s1152_s19, 1 }
   0xa   : > { %s2038_s20 = scalar_select %p1642_p1, 1, 0 }
   0xb   : > { %s2039_s21 = scalar_select %p1646_p2, 1, 0 }
   0xc   : > { %p1652_p4 = por %p1642_p1, %p54_p0  ;;  %p1153_p5 = scmp.ge.s32.totalorder %s1571_s17, 1 }
   0xd   : > { %p1657_p6 = por %p128_p3, %p54_p0  ;;  %p135_p7 = scmp.lt.s32.totalorder %s1571_s17, 3 }
   0xe   : > { %s2040_s22 = scalar_select %p1652_p4, 1, 0 }
   0xf   : > { %s2041_s23 = scalar_select %p1657_p6, 1, 0 }
  0x10   : > { %p1662_p8 = pnand %p1153_p5, %p135_p7  ;;  %s1573_s25 = smov [#allocation6]  }
  0x11   : > { %s147_s26 = sshll.u32 %s1573_s25, 4  ;;  %s29_s28 = sadd.s32 1, %s1567_s16  ;;  %s148_s26 = int_to_ptr.vmem [resolvable:$true] %s147_s26 }
  0x12   : > { %s2042_s24 = scalar_select %p1662_p8, 1, 0 }
  0x13   : > { %p1300_p9 = pneg %p1662_p8  ;;  %s1427_s4 = scalar_lea.hbm %s2031_s1, 256 }
  0x14   : > { %p1428_p12 = scmp.ne.s32.totalorder %s2031_s1, %s1427_s4  ;;  %p1434_p5 = scmp.lt.u32.totalorder %s1427_s4, %s2031_s1 }
  0x15   : > { %p1671_p11 = pnand %p1300_p9, %p1642_p1 }
  0x17   : > { %p1429_p13 = pneg %p1671_p11 }
  0x19   : > { %p1430_p0 = pnand %p1429_p13, %p1428_p12 }
  0x1b   : > { %p1431_p3 = pneg %p1430_p0 }
  0x1d   : > { %p1436_p7 = pnand %p1434_p5, %p1431_p3 }
  0x1f   : > { %1439 = shalt.err (!%p1436_p7)
}
  0x20   : > { %s1440_s9 = scalar_lea.vmem %s148_s26, 256  ;;  %p1448_p1 = scmp.lt.s32.totalorder %s148_s26, %s148_s26 }
  0x21   : > { %p1441_p9 = scmp.ne.s32.totalorder %s148_s26, %s1440_s9  ;;  %p1449_p4 = scmp.lt.s32.totalorder %s1440_s9, %s1440_s9 }
  0x23   : > { %p1443_p10 = pnand %p1441_p9, %p1429_p13  ;;  %p1450_p8 = por %p1449_p4, %p1448_p1 }
  0x25   : > { %p1444_p6 = pneg %p1443_p10 }
  0x27   : > { %p1451_p2 = pnand %p1450_p8, %p1444_p6 }
  0x29   : > { %1454 = shalt.err (!%p1451_p2)
}
  0x2a   : > { %s1574_s10 = smov 64   ;;  %s1575_s11 = smov 4  }
  0x2b   : > { %1303 = dma.hbm_to_vmem [thread:$0]  (!%p1671_p11), %s2031_s1, 256, %s148_s26, [#allocation7], %s1574_s10, %s1574_s10, %s1575_s11  }
  0x2c   : > { %p30_p1 = scmp.ge.s32.totalorder %s29_s28, 2  ;;  %s41_s25 = sadd.s32 1, %s1559_s14 }
  0x2d   : > { %p48_p2 = scmp.ne.s32.totalorder %s1559_s14, %s1555_s13  ;;  %p49_p4 = scmp.eq.s32.totalorder %s1571_s17, 0 }
  0x2e   : > { %s2059_s28 = smov (%p30_p1, %s29_s28), 0  ;;  %p2045_p8 = scmp.ne.s32.totalorder %s2039_s21, 0 }
  0x2f   : > { %p1698_p6 = por %p49_p4, %p48_p2  ;;  %s36_s27 = ssub.s32 %s1567_s16, %s2059_s28 }
  0x30   : > { %p1704_p10 = por %p2045_p8, %p48_p2  ;;  %p1313_p12 = scmp.lt.s32.totalorder %s1571_s17, 2 }
  0x31   : > { %p39_p11 = scmp.eq.s32.totalorder %s36_s27, 0  ;;  %s164_s26 = sand.u32 1, %s1559_s14  }
  0x32   : > { %s1156_s4 = sshll.u32 %s164_s26, 3  ;;  %s1202_s6 = sshll.u32 %s1567_s16, 7 }
  0x33   : > { %s1713_s5 = scalar_select %p39_p11, %s1559_s14, %s41_s25  }
  0x34   : > { %s1719_s9 = scalar_lea.hbm %s2030_s0, %s1202_s6  ;;  %s168_s21 = scalar_lea.vmem [#allocation3], %s1156_s4 }
  0x35   : > { %s176_s10 = sshll.u32 %s168_s21, 4  ;;  %p1725_p13 = pnand %p1313_p12, %p1698_p6  ;;  %s1721_s10 = int_to_ptr.vmem [resolvable:$true] %s176_s10 }
  0x36   : > { %s1729_s18 = scalar_lea.sflag [#allocation4], %s164_s26  ;;  %s1455_s19 = scalar_lea.hbm %s1719_s9, 128 }
  0x37   : > { %p1456_p0 = scmp.ne.s32.totalorder %s1719_s9, %s1455_s19  ;;  %p1457_p3 = pneg %p1725_p13 }
  0x38   : > { %s1460_s29 = scalar_lea.hbm %s2030_s0, 256  ;;  %p1461_p9 = scmp.lt.u32.totalorder %s1719_s9, %s2030_s0 }
  0x39   : > { %p1458_p5 = pnand %p1457_p3, %p1456_p0  ;;  %p1462_p1 = scmp.lt.u32.totalorder %s1460_s29, %s1455_s19 }
  0x3a   : > { %p1464_p4 = scmp.lt.u32.totalorder %s1455_s19, %s1719_s9 }
  0x3b   : > { %p1459_p7 = pneg %p1458_p5  ;;  %p1463_p2 = por %p1462_p1, %p1461_p9 }
  0x3d   : > { %p1465_p6 = por %p1464_p4, %p1463_p2 }
  0x3f   : > { %p1466_p8 = pnand %p1465_p6, %p1459_p7 }
  0x41   : > { %1469 = shalt.err (!%p1466_p8)
}
  0x42   : > { %s1470_s26 = scalar_lea.vmem %s1721_s10, 128  ;;  %s1576_s7 = smov [#allocation3]  }
  0x43   : > { %p1471_p12 = scmp.ne.s32.totalorder %s1721_s10, %s1470_s26  ;;  %s1475_s8 = sshll.u32 %s1576_s7, 4  ;;  %s1476_s8 = int_to_ptr.vmem [resolvable:$false] %s1475_s8 }
  0x44   : > { %s1477_s21 = scalar_lea.vmem %s1476_s8, 256  ;;  %p1478_p5 = scmp.lt.s32.totalorder %s1721_s10, %s1476_s8 }
  0x45   : > { %p1473_p11 = pnand %p1471_p12, %p1457_p3  ;;  %p1479_p9 = scmp.lt.s32.totalorder %s1477_s21, %s1470_s26 }
  0x47   : > { %p1474_p0 = pneg %p1473_p11  ;;  %p1480_p1 = por %p1479_p9, %p1478_p5 }
  0x49   : > { %p1481_p2 = pnand %p1480_p1, %p1474_p0 }
  0x4b   : > { %1484 = shalt.err (!%p1481_p2)
}
  0x4c   : > { %s1577_s19 = smov 16   ;;  %s1578_s25 = smov 1  }
  0x4d   : > { %1307 = dma.hbm_to_vmem [thread:$0]  (!%p1725_p13), %s1719_s9, 128, %s1721_s10, %s1729_s18, %s1577_s19, %s1577_s19, %s1578_s25  }
  0x4e   : > { %p2048_p3 = scmp.ne.s32.totalorder %s2042_s24, 0 }
  0x4f   : > { %s1760_s27 = sand.u32 (!%p2048_p3), 1, %s1555_s13   ;;  %p2049_p7 = scmp.ne.s32.totalorder (!%p2048_p3), %s2040_s22, 0 }
  0x50   : > { %188 = sbr.rel (%p2048_p3) target bundleno = 5700 (0x1644), region = 32  ;;  %s1160_s29 = sshll.u32 (!%p2048_p3), %s1760_s27, 3 }
  0x51   : > { %s191_s4 = scalar_lea.sflag (!%p2048_p3), [#allocation4], %s1760_s27  ;;  %s1764_s6 = scalar_lea.vmem (!%p2048_p3), [#allocation3], %s1160_s29 }
  0x57   : > { %1538 = dma.done.wait (%p2049_p7), %s191_s4, 128  }
  0x58   : > { %1540 = vsyncadd (%p2049_p7), %s191_s4, 4294967168  ;;  %p2050_p13 = scmp.ne.s32.totalorder %s2038_s20, 0 }
  0x5a   : > { %1542 = dma.done.wait (%p2050_p13), [#allocation7], 256  }
  0x5b   : > { %1544 = vsyncadd (%p2050_p13), [#allocation7], 4294967040  ;;  %s1162_s24 = sshll.u32 %s1760_s27, 4  ;;  %p1163_p4 = scmp.ne.s32.totalorder %s1563_s15, 0 }
  0x5c   : > { %s1775_s9 = scalar_lea.vmem [#allocation8], %s1162_s24  ;;  %vm228_vm0 = vcmask (!%p1163_p4), 254976   ;;  %v1579_v0 = vmov (!%p1163_p4), 0.0  }
  0x5d   : > { %227 = sbr.rel (%p1163_p4) target bundleno = 100 (0x64), region = 44  ;;  %229 = vst.msk [vmem:[#allocation2] sm:$0x3] (!%p1163_p4), %vm228_vm0, %v1579_v0 }
  0x64 PF: > { %v1778_v1 = vld [vmem:[#allocation6] sm:$0xff]   ;;  %v1580_v2 = vmov 0.0   ;;  %v1783_v3 = vld [vmem:[#allocation6 + $0x8] sm:$0xff]   ;;  %vm1581_vm1 = vmmov 0   ;;  %s1582_s10 = smov 64   ;;  %vm251_vm2 = vcmask 261120   ;;  %v315_v9 = vlaneseq }
  0x65   : > { %1228 = vmatprep.subr.bf16.mxu0 %v1580_v2  ;;  %1236 = vmatprep.subr.bf16.mxu1 %v1580_v2  ;;  %v235_v4 = vld [vmem:[#allocation2] sm:$0x3]  ;;  %v1583_v7 = vmov 1983009808   ;;  %s1584_s11 = smov 32   ;;  %s1585_s18 = smov 96  }
  0x66   : > { %1229 = vmatpush3.bf16.msra.mxu0 %v1778_v1  ;;  %1232 = vmatprep.mubr.msk.bf16.mxu0 %vm1581_vm1, %v1580_v2  ;;  %v1168_v5 = vld [vmem:[%s2032_s2] ss:$0 sm:$0xff]  ;;  %v238_v6 = vpack.c.bf16 %v235_v4, %v235_v4  ;;  %v313_v8 = vunpack.c.l.s4 %v1583_v7  ;;  %v316_v11 = vshrl.u32 %v315_v9, 7  ;;  %v236_v21 = vld [vmem:[%s1764_s6] sm:$0x1]  ;;  %vm359_vm3 = vcmask 254976  }
  0x67   : > { %1230 = vmatprep.subr.bf16.mxu0 %v1580_v2  ;;  %307 = vrot.lane.b32.xlu0 %v1168_v5, %s1582_s10  ;;  %v237_v22 = vunpack.c.l.bf16 %v236_v21  ;;  %v1169_v47 = vld [vmem:[%s1764_s6 + $0x1] sm:$0x1]  ;;  %s1203_s26 = sshll.u32 %s1563_s15, 8  ;;  %s1056_s7 = sshll.u32 %s1775_s9, 4  ;;  %s1976_s7 = int_to_ptr.vmem [resolvable:$true] %s1056_s7 }
  0x68   : > { %1237 = vmatpush3.bf16.msra.mxu1 %v1778_v1  ;;  %1240 = vmatprep.mubr.msk.bf16.mxu1 %vm1581_vm1, %v1580_v2  ;;  %v314_v10 = vunpack.c.0.s8 %v313_v8  ;;  %v363_v48 = vunpack.c.l.bf16 %v1169_v47  ;;  %s1974_s19 = scalar_lea.hbm %s2033_s3, %s1203_s26  ;;  %s1042_s25 = scalar_lea.sflag [#allocation5], %s1760_s27 }
  0x69   : > { %1238 = vmatprep.subr.bf16.mxu1 %v1580_v2  ;;  %s1485_s29 = scalar_lea.vmem %s1976_s7, 256  ;;  %s1586_s15 = smov [#allocation8]  }
  0x6a   : > { %1231 = vmatpush3.bf16.msra.mxu0 %v1783_v3  ;;  %v1809_v13 = vsub.s32 %v314_v10, %v316_v11  ;;  %v1173_v11 = vld [vmem:[%s1764_s6 + $0x2] sm:$0x1]  ;;  %p1486_p6 = scmp.ne.s32.totalorder %s1976_s7, %s1485_s29  ;;  %s1489_s4 = sshll.u32 %s1586_s15, 4  ;;  %s1490_s4 = int_to_ptr.vmem [resolvable:$false] %s1489_s4 }
  0x6b   : > { %1244 = vmatprep.subr.bf16.mxu0 %v1580_v2  ;;  %p1492_p11 = scmp.lt.s32.totalorder %s1976_s7, %s1490_s4 }
  0x6c   : > { %1239 = vmatpush3.bf16.msra.mxu1 %v1783_v3  ;;  %v342_v20 = vrot.slane %v235_v4, %v1809_v13  ;;  %p1487_p8 = pnand %p1486_p6, %p1704_p10 }
  0x6d   : > { %1233 = vmatmul.mubr.msk.bf16.vlgmr.msra.gmra.mrb[0].mxu0 %vm251_vm2, %v238_v6  ;;  %1252 = vmatprep.subr.bf16.mxu1 %v1580_v2 }
  0x6e   : > { %1245 = vmatpush3.bf16.msra.mxu0 %v1778_v1  ;;  %1248 = vmatprep.mubr.msk.bf16.mxu0 %vm1581_vm1, %v1580_v2  ;;  %p1488_p12 = pneg %p1487_p8 }
  0x6f   : > { %1246 = vmatprep.subr.bf16.mxu0 %v1580_v2 }
  0x72   : > { %1247 = vmatpush3.bf16.msra.mxu0 %v1783_v3 }
  0x73   : > { %1260 = vmatprep.subr.bf16.mxu0 %v1580_v2 }
  0xd9   : > { %v1807_v12 = vpop.permute.xlu0 %307 }
 0x140   : > { %v289_v14 = vpop.f32.mrb[0].mxu0 }
 0x141   : > { %v310_v15 = vadd.f32 %v1807_v12, %v289_v14  ;;  %v1234_v16 = vpop.f32.mrb[1].mxu0  ;;  %v295_v23 = vadd.f32 %v289_v14, %v237_v22  ;;  %v460_v14 = vunpack.c.l.bf16 %v1173_v11 }
 0x142   : > { %v292_v17 = vpop.f32.mrb[2].mxu0 }
 0x143   : > { %v318_v18 = vrot.slane %v310_v15, %v1809_v13  ;;  %v1235_v19 = vpop.f32.mrb[3].mxu0  ;;  %v1167_v24 = vmul.f32 -1.442695, %v295_v23 }
 0x145   : > { %319 = vrot.lane.b32.xlu0 %v318_v18, %s1582_s10  ;;  %1379 = vpow2.f32 %v1167_v24 }
 0x149   : > { %343 = vrot.lane.b32.xlu0 %v342_v20, %s1584_s11 }
 0x14f   : > { %v1380_v25 = vpop.eup %1379 }
 0x150   : > { %v299_v26 = vadd.f32 1.0, %v1380_v25 }
 0x152   : > { %1381 = vrcp.f32 %v299_v26 }
 0x15c   : > { %v1382_v27 = vpop.eup %1381 }
 0x15d   : > { %v329_v34 = vsub.f32 1.0, %v1382_v27 }
 0x1b7   : > { %v320_v28 = vpop.permute.xlu0 %319 }
 0x1b8   : > { %v322_v29 = vmul.f32 %v1382_v27, %v320_v28 }
 0x1ba   : > { %324 = vrot.lane.b32.xlu1 %v322_v29, %s1582_s10 }
 0x1bb   : > { %v344_v33 = vpop.permute.xlu0 %343 }
 0x1bc   : > { %v346_v36 = vmul.f32 %v1382_v27, %v344_v33 }
 0x22c   : > { %v325_v30 = vpop.permute.xlu1 %324 }
 0x22d   : > { %v327_v31 = vadd.f32 %v325_v30, %v237_v22 }
 0x22f   : > { %1383 = vtanh.f32 %v327_v31 }
 0x239   : > { %v1384_v32 = vpop.eup %1383 }
 0x23a   : > { %331 = vrot.lane.b32.xlu1 %v1384_v32, %s1585_s18 }
 0x2ac   : > { %v332_v35 = vpop.permute.xlu1 %331 }
 0x2ad   : > { %v334_v37 = vmul.f32 %v332_v35, %v329_v34 }
 0x2af   : > { %v1819_v38 = vadd.f32 %v346_v36, %v334_v37 }
 0x2b1   : > { %v364_v39 = vpack.c.bf16 %v1819_v38, %v1819_v38 }
 0x2b3   : > { %366 = vrot.lane.b32.xlu1 %v364_v39, %s1585_s18  ;;  %v1177_v39 = vld [vmem:[%s1764_s6 + $0x3] sm:$0x1] }
 0x325   : > { %v367_v40 = vpop.permute.xlu1 %366 }
 0x326   : > { %1241 = vmatmul.mubr.msk.bf16.vlgmr.msra.gmra.mrb[0].mxu1 %vm251_vm2, %v367_v40  ;;  %v557_v40 = vunpack.c.l.bf16 %v1177_v39 }
 0x327   : > { %1253 = vmatpush3.bf16.msra.mxu1 %v1778_v1  ;;  %1256 = vmatprep.mubr.msk.bf16.mxu1 %vm1581_vm1, %v1580_v2 }
 0x328   : > { %1254 = vmatprep.subr.bf16.mxu1 %v1580_v2 }
 0x32b   : > { %1255 = vmatpush3.bf16.msra.mxu1 %v1783_v3 }
 0x32c   : > { %1268 = vmatprep.subr.bf16.mxu1 %v1580_v2 }
 0x3f9   : > { %v405_v41 = vpop.f32.mrb[0].mxu1 }
 0x3fa   : > { %v418_v42 = vadd.f32 %v405_v41, %v1807_v12  ;;  %v1242_v43 = vpop.f32.mrb[1].mxu1  ;;  %v411_v49 = vadd.f32 %v405_v41, %v363_v48 }
 0x3fb   : > { %v408_v44 = vpop.f32.mrb[2].mxu1 }
 0x3fc   : > { %v426_v45 = vrot.slane %v418_v42, %v1809_v13  ;;  %v1243_v46 = vpop.f32.mrb[3].mxu1  ;;  %v1171_v50 = vmul.f32 -1.442695, %v411_v49 }
 0x3fe   : > { %427 = vrot.lane.b32.xlu0 %v426_v45, %s1582_s10  ;;  %1385 = vpow2.f32 %v1171_v50 }
 0x408   : > { %v1386_v51 = vpop.eup %1385 }
 0x409   : > { %v415_v52 = vadd.f32 1.0, %v1386_v51 }
 0x40b   : > { %1387 = vrcp.f32 %v415_v52 }
 0x415   : > { %v1388_v53 = vpop.eup %1387 }
 0x416   : > { %v437_v59 = vsub.f32 1.0, %v1388_v53  ;;  %v443_v61 = vmul.f32 %v1388_v53, %v1819_v38 }
 0x470   : > { %v428_v54 = vpop.permute.xlu0 %427 }
 0x471   : > { %v430_v55 = vmul.f32 %v1388_v53, %v428_v54 }
 0x473   : > { %432 = vrot.lane.b32.xlu1 %v430_v55, %s1582_s10 }
 0x4e5   : > { %v433_v56 = vpop.permute.xlu1 %432 }
 0x4e6   : > { %v435_v57 = vadd.f32 %v433_v56, %v363_v48 }
 0x4e8   : > { %1389 = vtanh.f32 %v435_v57 }
 0x4f2   : > { %v1390_v58 = vpop.eup %1389 }
 0x4f3   : > { %439 = vrot.lane.b32.xlu0 %v1390_v58, %s1585_s18 }
 0x565   : > { %v440_v60 = vpop.permute.xlu0 %439 }
 0x566   : > { %v442_v62 = vmul.f32 %v440_v60, %v437_v59 }
 0x568   : > { %v1838_v63 = vadd.f32 %v443_v61, %v442_v62 }
 0x56a   : > { %v461_v0 = vpack.c.bf16 %v1838_v63, %v1838_v63 }
 0x56c   : > { %463 = vrot.lane.b32.xlu1 %v461_v0, %s1585_s18 }
 0x5de   : > { %v464_v4 = vpop.permute.xlu1 %463 }
 0x5df   : > { %1249 = vmatmul.mubr.msk.bf16.vlgmr.msra.gmra.mrb[4].mxu0 %vm251_vm2, %v464_v4  ;;  %v1181_v4 = vld [vmem:[%s1764_s6 + $0x4] sm:$0x1] }
 0x5e0   : > { %1261 = vmatpush3.bf16.msra.mxu0 %v1778_v1  ;;  %1264 = vmatprep.mubr.msk.bf16.mxu0 %vm1581_vm1, %v1580_v2 }
 0x5e1   : > { %1262 = vmatprep.subr.bf16.mxu0 %v1580_v2 }
 0x5e4   : > { %1263 = vmatpush3.bf16.msra.mxu0 %v1783_v3 }
 0x5e5   : > { %1276 = vmatprep.subr.bf16.mxu0 %v1580_v2 }
 0x6b2   : > { %v502_v5 = vpop.f32.mrb[4].mxu0 }
 0x6b3   : > { %v515_v6 = vadd.f32 %v502_v5, %v1807_v12  ;;  %v1250_v7 = vpop.f32.mrb[5].mxu0  ;;  %v508_v15 = vadd.f32 %v502_v5, %v460_v14  ;;  %v654_v5 = vunpack.c.l.bf16 %v1181_v4 }
 0x6b4   : > { %v505_v8 = vpop.f32.mrb[6].mxu0 }
 0x6b5   : > { %v523_v9 = vrot.slane %v515_v6, %v1809_v13  ;;  %v1251_v10 = vpop.f32.mrb[7].mxu0  ;;  %v1175_v16 = vmul.f32 -1.442695, %v508_v15 }
 0x6b7   : > { %524 = vrot.lane.b32.xlu0 %v523_v9, %s1582_s10  ;;  %1391 = vpow2.f32 %v1175_v16 }
 0x6c1   : > { %v1392_v17 = vpop.eup %1391 }
 0x6c2   : > { %v512_v18 = vadd.f32 1.0, %v1392_v17 }
 0x6c4   : > { %1393 = vrcp.f32 %v512_v18 }
 0x6ce   : > { %v1394_v19 = vpop.eup %1393 }
 0x6cf   : > { %v534_v25 = vsub.f32 1.0, %v1394_v19  ;;  %v540_v27 = vmul.f32 %v1394_v19, %v1838_v63 }
 0x729   : > { %v525_v20 = vpop.permute.xlu0 %524 }
 0x72a   : > { %v527_v21 = vmul.f32 %v1394_v19, %v525_v20 }
 0x72c   : > { %529 = vrot.lane.b32.xlu1 %v527_v21, %s1582_s10 }
 0x79e   : > { %v530_v22 = vpop.permute.xlu1 %529 }
 0x79f   : > { %v532_v23 = vadd.f32 %v530_v22, %v460_v14 }
 0x7a1   : > { %1395 = vtanh.f32 %v532_v23 }
 0x7ab   : > { %v1396_v24 = vpop.eup %1395 }
 0x7ac   : > { %536 = vrot.lane.b32.xlu0 %v1396_v24, %s1585_s18 }
 0x81e   : > { %v537_v26 = vpop.permute.xlu0 %536 }
 0x81f   : > { %v539_v28 = vmul.f32 %v537_v26, %v534_v25 }
 0x821   : > { %v1857_v29 = vadd.f32 %v540_v27, %v539_v28 }
 0x823   : > { %v558_v30 = vpack.c.bf16 %v1857_v29, %v1857_v29 }
 0x825   : > { %560 = vrot.lane.b32.xlu1 %v558_v30, %s1585_s18 }
 0x897   : > { %v561_v31 = vpop.permute.xlu1 %560 }
 0x898   : > { %1257 = vmatmul.mubr.msk.bf16.vlgmr.msra.gmra.mrb[4].mxu1 %vm251_vm2, %v561_v31 }
 0x899   : > { %1269 = vmatpush3.bf16.msra.mxu1 %v1778_v1  ;;  %1272 = vmatprep.mubr.msk.bf16.mxu1 %vm1581_vm1, %v1580_v2 }
 0x89a   : > { %1270 = vmatprep.subr.bf16.mxu1 %v1580_v2 }
 0x89d   : > { %1271 = vmatpush3.bf16.msra.mxu1 %v1783_v3 }
 0x89e   : > { %1284 = vmatprep.subr.bf16.mxu1 %v1580_v2 }
 0x96b   : > { %v599_v32 = vpop.f32.mrb[4].mxu1 }
 0x96c   : > { %v612_v33 = vadd.f32 %v599_v32, %v1807_v12  ;;  %v1258_v34 = vpop.f32.mrb[5].mxu1  ;;  %v605_v41 = vadd.f32 %v599_v32, %v557_v40  ;;  %v1185_v32 = vld [vmem:[%s1764_s6 + $0x5] sm:$0x1] }
 0x96d   : > { %v602_v35 = vpop.f32.mrb[6].mxu1 }
 0x96e   : > { %v620_v36 = vrot.slane %v612_v33, %v1809_v13  ;;  %v1259_v37 = vpop.f32.mrb[7].mxu1  ;;  %v1179_v42 = vmul.f32 -1.442695, %v605_v41  ;;  %v751_v33 = vunpack.c.l.bf16 %v1185_v32 }
 0x970   : > { %621 = vrot.lane.b32.xlu0 %v620_v36, %s1582_s10  ;;  %1397 = vpow2.f32 %v1179_v42 }
 0x97a   : > { %v1398_v43 = vpop.eup %1397 }
 0x97b   : > { %v609_v44 = vadd.f32 1.0, %v1398_v43 }
 0x97d   : > { %1399 = vrcp.f32 %v609_v44 }
 0x987   : > { %v1400_v45 = vpop.eup %1399 }
 0x988   : > { %v631_v51 = vsub.f32 1.0, %v1400_v45  ;;  %v637_v53 = vmul.f32 %v1400_v45, %v1857_v29 }
 0x9e2   : > { %v622_v46 = vpop.permute.xlu0 %621 }
 0x9e3   : > { %v624_v47 = vmul.f32 %v1400_v45, %v622_v46 }
 0x9e5   : > { %626 = vrot.lane.b32.xlu1 %v624_v47, %s1582_s10 }
 0xa57   : > { %v627_v48 = vpop.permute.xlu1 %626 }
 0xa58   : > { %v629_v49 = vadd.f32 %v627_v48, %v557_v40 }
 0xa5a   : > { %1401 = vtanh.f32 %v629_v49 }
 0xa64   : > { %v1402_v50 = vpop.eup %1401 }
 0xa65   : > { %633 = vrot.lane.b32.xlu0 %v1402_v50, %s1585_s18 }
 0xad7   : > { %v634_v52 = vpop.permute.xlu0 %633 }
 0xad8   : > { %v636_v54 = vmul.f32 %v634_v52, %v631_v51 }
 0xada   : > { %v1876_v55 = vadd.f32 %v637_v53, %v636_v54 }
 0xadc   : > { %v655_v56 = vpack.c.bf16 %v1876_v55, %v1876_v55 }
 0xade   : > { %657 = vrot.lane.b32.xlu1 %v655_v56, %s1585_s18  ;;  %v1189_v56 = vld [vmem:[%s1764_s6 + $0x6] sm:$0x1] }
 0xb50   : > { %v658_v57 = vpop.permute.xlu1 %657 }
 0xb51   : > { %1265 = vmatmul.mubr.msk.bf16.vlgmr.msra.gmra.mrb[8].mxu0 %vm251_vm2, %v658_v57  ;;  %v848_v57 = vunpack.c.l.bf16 %v1189_v56 }
 0xb52   : > { %1277 = vmatpush3.bf16.msra.mxu0 %v1778_v1  ;;  %1280 = vmatprep.mubr.msk.bf16.mxu0 %vm1581_vm1, %v1580_v2 }
 0xb53   : > { %1278 = vmatprep.subr.bf16.mxu0 %v1580_v2 }
 0xb56   : > { %1279 = vmatpush3.bf16.msra.mxu0 %v1783_v3 }
 0xc24   : > { %v696_v58 = vpop.f32.mrb[8].mxu0 }
 0xc25   : > { %v709_v59 = vadd.f32 %v696_v58, %v1807_v12  ;;  %v1266_v60 = vpop.f32.mrb[9].mxu0  ;;  %v702_v6 = vadd.f32 %v696_v58, %v654_v5 }
 0xc26   : > { %v699_v61 = vpop.f32.mrb[10].mxu0 }
 0xc27   : > { %v717_v62 = vrot.slane %v709_v59, %v1809_v13  ;;  %v1267_v0 = vpop.f32.mrb[11].mxu0  ;;  %v1183_v7 = vmul.f32 -1.442695, %v702_v6 }
 0xc29   : > { %718 = vrot.lane.b32.xlu0 %v717_v62, %s1582_s10  ;;  %1403 = vpow2.f32 %v1183_v7 }
 0xc33   : > { %v1404_v8 = vpop.eup %1403 }
 0xc34   : > { %v706_v9 = vadd.f32 1.0, %v1404_v8 }
 0xc36   : > { %1405 = vrcp.f32 %v706_v9 }
 0xc40   : > { %v1406_v10 = vpop.eup %1405 }
 0xc41   : > { %v728_v18 = vsub.f32 1.0, %v1406_v10  ;;  %v734_v20 = vmul.f32 %v1406_v10, %v1876_v55 }
 0xc9b   : > { %v719_v11 = vpop.permute.xlu0 %718 }
 0xc9c   : > { %v721_v14 = vmul.f32 %v1406_v10, %v719_v11 }
 0xc9e   : > { %723 = vrot.lane.b32.xlu1 %v721_v14, %s1582_s10 }
 0xd10   : > { %v724_v15 = vpop.permute.xlu1 %723 }
 0xd11   : > { %v726_v16 = vadd.f32 %v724_v15, %v654_v5 }
 0xd13   : > { %1407 = vtanh.f32 %v726_v16 }
 0xd1d   : > { %v1408_v17 = vpop.eup %1407 }
 0xd1e   : > { %730 = vrot.lane.b32.xlu0 %v1408_v17, %s1585_s18 }
 0xd90   : > { %v731_v19 = vpop.permute.xlu0 %730 }
 0xd91   : > { %v733_v21 = vmul.f32 %v731_v19, %v728_v18 }
 0xd93   : > { %v1894_v22 = vadd.f32 %v734_v20, %v733_v21 }
 0xd95   : > { %v752_v23 = vpack.c.bf16 %v1894_v22, %v1894_v22 }
 0xd97   : > { %754 = vrot.lane.b32.xlu1 %v752_v23, %s1585_s18 }
 0xe09   : > { %v755_v24 = vpop.permute.xlu1 %754 }
 0xe0a   : > { %1273 = vmatmul.mubr.msk.bf16.vlgmr.msra.gmra.mrb[8].mxu1 %vm251_vm2, %v755_v24  ;;  %v1193_v24 = vld [vmem:[%s1764_s6 + $0x7] sm:$0x1]  ;;  %s1491_s6 = scalar_lea.vmem %s1490_s4, 512 }
 0xe0b   : > { %1285 = vmatpush3.bf16.msra.mxu1 %v1778_v1  ;;  %1288 = vmatprep.mubr.msk.bf16.mxu1 %vm1581_vm1, %v1580_v2  ;;  %p1493_p0 = scmp.lt.s32.totalorder %s1491_s6, %s1485_s29 }
 0xe0c   : > { %1286 = vmatprep.subr.bf16.mxu1 %v1580_v2 }
 0xe0d   : > { %p1494_p5 = por %p1493_p0, %p1492_p11 }
 0xe0f   : > { %1287 = vmatpush3.bf16.msra.mxu1 %v1783_v3  ;;  %p1495_p9 = pnand %p1494_p5, %p1488_p12 }
 0xedd   : > { %v793_v25 = vpop.f32.mrb[8].mxu1 }
 0xede   : > { %v806_v26 = vadd.f32 %v793_v25, %v1807_v12  ;;  %v1274_v27 = vpop.f32.mrb[9].mxu1  ;;  %v799_v1 = vadd.f32 %v793_v25, %v751_v33  ;;  %v945_v25 = vunpack.c.l.bf16 %v1193_v24 }
 0xedf   : > { %v796_v28 = vpop.f32.mrb[10].mxu1 }
 0xee0   : > { %v814_v30 = vrot.slane %v806_v26, %v1809_v13  ;;  %v1275_v31 = vpop.f32.mrb[11].mxu1  ;;  %v1187_v34 = vmul.f32 -1.442695, %v799_v1  ;;  %v549_v1 = vrot.slane %v1857_v29, %v1809_v13 }
 0xee2   : > { %815 = vrot.lane.b32.xlu0 %v814_v30, %s1582_s10  ;;  %1409 = vpow2.f32 %v1187_v34  ;;  %v743_v34 = vrot.slane %v1894_v22, %v1809_v13 }
 0xeec   : > { %v1410_v35 = vpop.eup %1409 }
 0xeed   : > { %v803_v36 = vadd.f32 1.0, %v1410_v35 }
 0xeef   : > { %1411 = vrcp.f32 %v803_v36 }
 0xef9   : > { %v1412_v2 = vpop.eup %1411 }
 0xefa   : > { %v825_v42 = vsub.f32 1.0, %v1412_v2  ;;  %v831_v44 = vmul.f32 %v1412_v2, %v1894_v22 }
 0xf54   : > { %v816_v3 = vpop.permute.xlu0 %815 }
 0xf55   : > { %v818_v37 = vmul.f32 %v1412_v2, %v816_v3 }
 0xf57   : > { %820 = vrot.lane.b32.xlu1 %v818_v37, %s1582_s10 }
 0xfc9   : > { %v821_v39 = vpop.permute.xlu1 %820 }
 0xfca   : > { %v823_v40 = vadd.f32 %v821_v39, %v751_v33  ;;  %v452_v39 = vrot.slane %v1838_v63, %v1809_v13 }
 0xfcc   : > { %1413 = vtanh.f32 %v823_v40  ;;  %v646_v40 = vrot.slane %v1876_v55, %v1809_v13 }
 0xfd6   : > { %v1414_v41 = vpop.eup %1413 }
 0xfd7   : > { %827 = vrot.lane.b32.xlu0 %v1414_v41, %s1585_s18 }
0x1049   : > { %v828_v43 = vpop.permute.xlu0 %827 }
0x104a   : > { %v830_v45 = vmul.f32 %v828_v43, %v825_v42 }
0x104c   : > { %v1912_v46 = vadd.f32 %v831_v44, %v830_v45 }
0x104e   : > { %v849_v47 = vpack.c.bf16 %v1912_v46, %v1912_v46  ;;  %v840_v41 = vrot.slane %v1912_v46, %v1809_v13 }
0x1050   : > { %851 = vrot.lane.b32.xlu1 %v849_v47, %s1585_s18 }
0x10c2   : > { %v852_v48 = vpop.permute.xlu1 %851 }
0x10c3   : > { %1281 = vmatmul.mubr.msk.bf16.vlgmr.msra.gmra.mrb[12].mxu0 %vm251_vm2, %v852_v48 }
0x1196   : > { %v890_v49 = vpop.f32.mrb[12].mxu0 }
0x1197   : > { %v903_v50 = vadd.f32 %v890_v49, %v1807_v12  ;;  %v1282_v51 = vpop.f32.mrb[13].mxu0  ;;  %v896_v58 = vadd.f32 %v890_v49, %v848_v57 }
0x1198   : > { %v893_v52 = vpop.f32.mrb[14].mxu0 }
0x1199   : > { %v911_v53 = vrot.slane %v903_v50, %v1809_v13  ;;  %v1283_v54 = vpop.f32.mrb[15].mxu0  ;;  %v1191_v59 = vmul.f32 -1.442695, %v896_v58 }
0x119b   : > { %912 = vrot.lane.b32.xlu0 %v911_v53, %s1582_s10  ;;  %1415 = vpow2.f32 %v1191_v59 }
0x11a5   : > { %v1416_v60 = vpop.eup %1415 }
0x11a6   : > { %v900_v61 = vadd.f32 1.0, %v1416_v60 }
0x11a8   : > { %1417 = vrcp.f32 %v900_v61 }
0x11b2   : > { %v1418_v62 = vpop.eup %1417 }
0x11b3   : > { %v922_v8 = vsub.f32 1.0, %v1418_v62  ;;  %v928_v10 = vmul.f32 %v1418_v62, %v1912_v46 }
0x120d   : > { %v913_v0 = vpop.permute.xlu0 %912 }
0x120e   : > { %v915_v4 = vmul.f32 %v1418_v62, %v913_v0 }
0x1210   : > { %917 = vrot.lane.b32.xlu1 %v915_v4, %s1582_s10 }
0x1282   : > { %v918_v5 = vpop.permute.xlu1 %917 }
0x1283   : > { %v920_v6 = vadd.f32 %v918_v5, %v848_v57 }
0x1285   : > { %1419 = vtanh.f32 %v920_v6 }
0x128f   : > { %v1420_v7 = vpop.eup %1419 }
0x1290   : > { %924 = vrot.lane.b32.xlu0 %v1420_v7, %s1585_s18 }
0x1302   : > { %v925_v9 = vpop.permute.xlu0 %924 }
0x1303   : > { %v927_v11 = vmul.f32 %v925_v9, %v922_v8 }
0x1305   : > { %v929_v14 = vadd.f32 %v928_v10, %v927_v11 }
0x1307   : > { %v946_v15 = vpack.c.bf16 %v929_v14, %v929_v14  ;;  %v937_v35 = vrot.slane %v929_v14, %v1809_v13 }
0x1309   : > { %948 = vrot.lane.b32.xlu1 %v946_v15, %s1585_s18 }
0x137b   : > { %v949_v16 = vpop.permute.xlu1 %948 }
0x137c   : > { %1289 = vmatmul.mubr.msk.bf16.vlgmr.msra.gmra.mrb[12].mxu1 %vm251_vm2, %v949_v16 }
0x144f   : > { %v987_v17 = vpop.f32.mrb[12].mxu1 }
0x1450   : > { %v1000_v18 = vadd.f32 %v987_v17, %v1807_v12  ;;  %v1290_v19 = vpop.f32.mrb[13].mxu1  ;;  %v993_v26 = vadd.f32 %v987_v17, %v945_v25  ;;  %v355_v12 = vrot.slane %v1819_v38, %v1809_v13 }
0x1451   : > { %v990_v20 = vpop.f32.mrb[14].mxu1 }
0x1452   : > { %v1008_v21 = vrot.slane %v1000_v18, %v1809_v13  ;;  %v1291_v23 = vpop.f32.mrb[15].mxu1  ;;  %v1195_v27 = vmul.f32 -1.442695, %v993_v26 }
0x1454   : > { %1009 = vrot.lane.b32.xlu0 %v1008_v21, %s1582_s10  ;;  %1421 = vpow2.f32 %v1195_v27 }
0x145e   : > { %v1422_v28 = vpop.eup %1421 }
0x145f   : > { %v997_v30 = vadd.f32 1.0, %v1422_v28 }
0x1461   : > { %1423 = vrcp.f32 %v997_v30 }
0x146b   : > { %v1424_v31 = vpop.eup %1423 }
0x146c   : > { %v1019_v42 = vsub.f32 1.0, %v1424_v31  ;;  %v1025_v43 = vmul.f32 %v1424_v31, %v929_v14 }
0x14c6   : > { %v1010_v32 = vpop.permute.xlu0 %1009 }
0x14c7   : > { %v1012_v33 = vmul.f32 %v1424_v31, %v1010_v32 }
0x14c9   : > { %1014 = vrot.lane.b32.xlu1 %v1012_v33, %s1582_s10 }
0x14cd   : > { %356 = vrot.lane.b32.xlu1 %v355_v12, %s1585_s18 }
0x14d1   : > { %550 = vrot.lane.b32.xlu1 %v549_v1, %s1585_s18 }
0x14d5   : > { %744 = vrot.lane.b32.xlu1 %v743_v34, %s1585_s18 }
0x14d9   : > { %938 = vrot.lane.b32.xlu1 %v937_v35, %s1585_s18 }
0x153b   : > { %v1015_v36 = vpop.permute.xlu1 %1014 }
0x153c   : > { %v1017_v38 = vadd.f32 %v1015_v36, %v945_v25 }
0x153e   : > { %1425 = vtanh.f32 %v1017_v38 }
0x153f   : > { %v357_v2 = vpop.permute.xlu1 %356 }
0x1540   : > { %360 = vst.msk [vmem:[%s1775_s9] sm:$0x3] %vm359_vm3, %v357_v2 }
0x1543   : > { %v551_v29 = vpop.permute.xlu1 %550 }
0x1544   : > { %1176 = vst.msk [vmem:[%s1775_s9 + $0x4] sm:$0x3] %vm359_vm3, %v551_v29 }
0x1547   : > { %v745_v3 = vpop.permute.xlu1 %744 }
0x1548   : > { %v1426_v37 = vpop.eup %1425  ;;  %1184 = vst.msk [vmem:[%s1775_s9 + $0x8] sm:$0x3] %vm359_vm3, %v745_v3 }
0x1549   : > { %1021 = vrot.lane.b32.xlu0 %v1426_v37, %s1585_s18 }
0x154b   : > { %v939_v22 = vpop.permute.xlu1 %938 }
0x154c   : > { %1192 = vst.msk [vmem:[%s1775_s9 + $0xc] sm:$0x3] %vm359_vm3, %v939_v22 }
0x154d   : > { %453 = vrot.lane.b32.xlu0 %v452_v39, %s1585_s18 }
0x1551   : > { %647 = vrot.lane.b32.xlu0 %v646_v40, %s1585_s18 }
0x1555   : > { %841 = vrot.lane.b32.xlu0 %v840_v41, %s1585_s18 }
0x15bb   : > { %v1022_v63 = vpop.permute.xlu0 %1021 }
0x15bc   : > { %v1024_v44 = vmul.f32 %v1022_v63, %v1019_v42 }
0x15be   : > { %v1026_v45 = vadd.f32 %v1025_v43, %v1024_v44 }
0x15bf   : > { %v454_v47 = vpop.permute.xlu0 %453 }
0x15c0   : > { %1172 = vst.msk [vmem:[%s1775_s9 + $0x2] sm:$0x3] %vm359_vm3, %v454_v47  ;;  %v1034_v55 = vrot.slane %v1026_v45, %v1809_v13 }
0x15c2   : > { %1035 = vrot.lane.b32.xlu0 %v1034_v55, %s1585_s18 }
0x15c3   : > { %v648_v48 = vpop.permute.xlu0 %647 }
0x15c4   : > { %1180 = vst.msk [vmem:[%s1775_s9 + $0x6] sm:$0x3] %vm359_vm3, %v648_v48 }
0x15c7   : > { %v842_v46 = vpop.permute.xlu0 %841 }
0x15c8   : > { %1188 = vst.msk [vmem:[%s1775_s9 + $0xa] sm:$0x3] %vm359_vm3, %v842_v46 }
0x1634   : > { %v1036_v13 = vpop.permute.xlu0 %1035 }
0x1635   : > { %1196 = vst.msk [vmem:[%s1775_s9 + $0xe] sm:$0x3] %vm359_vm3, %v1036_v13  ;;  %1040 = vst.msk [vmem:[#allocation2] sm:$0x3] %vm359_vm3, %v1036_v13 }
0x1636   : > { %1498 = shalt.err (!%p1495_p9)
}
0x1637   : > { %s1499_s24 = scalar_lea.hbm %s1974_s19, 256  ;;  %s1503_s22 = scalar_lea.hbm %s2033_s3, 512 }
0x1638   : > { %p1500_p1 = scmp.ne.s32.totalorder %s1974_s19, %s1499_s24  ;;  %p1504_p7 = scmp.lt.u32.totalorder %s1974_s19, %s2033_s3 }
0x1639   : > { %p1505_p13 = scmp.lt.u32.totalorder %s1503_s22, %s1499_s24  ;;  %p1507_p6 = scmp.lt.u32.totalorder %s1499_s24, %s1974_s19 }
0x163a   : > { %p1501_p2 = pnand %p1500_p1, %p1704_p10 }
0x163b   : > { %p1506_p4 = por %p1505_p13, %p1504_p7 }
0x163c   : > { %p1502_p3 = pneg %p1501_p2 }
0x163d   : > { %p1508_p8 = por %p1507_p6, %p1506_p4 }
0x163f   : > { %p1509_p12 = pnand %p1508_p8, %p1502_p3 }
0x1641   : > { %1512 = shalt.err (!%p1509_p12)
}
0x1642   : > { %s1587_s26 = smov 2  }
0x1643   : > { %1298 = dma.vmem_to_hbm [thread:$0]  (%p1704_p10), %s1976_s7, 256, %s1974_s19, %s1042_s25, %s1584_s11, %s1584_s11, %s1587_s26  }
0x1644 PF: > { %s1071_s8 = sand.u32 1, %s1551_s12   ;;  %p2051_p11 = scmp.ne.s32.totalorder %s2041_s23, 0 }
0x1645   : > { %p2052_p0 = scmp.ge.s32.totalorder %s1571_s17, 2  ;;  %s1072_s21 = scalar_lea.sflag [#allocation5], %s1071_s8 }
0x1647   : > { %p1309_p5 = pnand %p2052_p0, %p2051_p11 }
0x1649   : > { %1546 = dma.done.wait (!%p1309_p5), %s1072_s21, 256  }
0x164a   : > { %1548 = vsyncadd (!%p1309_p5), %s1072_s21, 4294967040  ;;  %s20_s17 = sadd.s32 1, %s1571_s17   ;;  %s2053_s12 = smov %s1555_s13 }
0x164b   : > { %p17_p9 = scmp.ge.s32.totalorder %s20_s17, 4   ;;  %s2054_s13 = smov %s1559_s14 }
0x164c   : > { %s2055_s14 = smov %s1713_s5  ;;  %s2056_s15 = smov %s1567_s16 }
0x164d   : > { %s2057_s16 = smov %s2059_s28  ;;  %19 = sbr.rel (!%p17_p9) target bundleno = 7 (0x7), region = 99 }
0x1654   :  { %1077 = vsyncpa [#allocation4], 1 }
0x1655   :  { %1079 = vsyncpa [#allocation4 + $0x1], 1 }
0x1656   :  { %1080 = vsyncpa [#allocation7], 1 }
0x1657   :  { %1081 = vsyncpa [#allocation5], 1 }
0x1658   :  { %1083 = vsyncpa [#allocation5 + $0x1], 1 }

</bundles_post_ra>
